<compile_context>
chip_gen: v7x
topology: tpu7x:2x2x1
jax: 0.10.0
libtpu: 0.0.40
codegen_flags: <defaults>
</compile_context>

<pallas_src>
import jax
import jax.numpy as jnp
from jax.experimental import pallas as pl
from jax.experimental.pallas import tpu as pltpu


# ----------------------------------------------------------------------------
# Generation-aware VMEM budgets
# ----------------------------------------------------------------------------

def _query_vmem_capacity_bytes() -> int:
    """Per-TensorCore VMEM capacity; conservative fallback is v7x's 64 MiB."""
    try:
        info = pltpu.get_tpu_info()
        cap = int(getattr(info, "vmem_capacity_bytes", 0))
        if cap > 0:
            return cap
    except Exception:
        pass
    return 64 * 1024 * 1024


_VMEM_CAPACITY_BYTES = _query_vmem_capacity_bytes()
# Working-set budget used for path selection (~96 MiB on v5e/v6e, ~48 MiB on v7x).
_VMEM_BUDGET_BYTES = (_VMEM_CAPACITY_BYTES * 3) // 4
# Scoped VMEM limit handed to the compiler: below physical capacity so the
# compiler keeps headroom for its internal scratch.
_VMEM_LIMIT_BYTES = (_VMEM_CAPACITY_BYTES * 7) // 8


# ----------------------------------------------------------------------------
# Tiling helpers
# ----------------------------------------------------------------------------

def _pick_tile(dim: int, preferred=(512, 256, 128)) -> int:
    """Largest MXU-friendly tile dividing `dim` (falls back to the full dim)."""
    for cand in preferred:
        if dim >= cand and dim % cand == 0:
            return cand
    return dim


def _pick_batch_tile(batch: int) -> int:
    """Batch tile: big for the MXU M-dim.  Prefer an even number of grid steps
    (balances the 'parallel' axis across v7x's 2 TensorCores), then >=2 steps,
    then fall back to the largest dividing tile."""
    for cand in (512, 256, 128):
        if batch % cand == 0:
            steps = batch // cand
            if steps >= 2 and steps % 2 == 0:
                return cand
    for cand in (512, 256, 128):
        if batch % cand == 0 and batch // cand >= 2:
            return cand
    return _pick_tile(batch)


# ----------------------------------------------------------------------------
# Fused path: all stages in one pallas_call (weight stack resident in VMEM)
# ----------------------------------------------------------------------------

def _fused_kernel_factory(stage_num: int):
    def kernel(x_ref, w_ref, b_ref, o_ref):
        # x_ref: (tm, H)   f32/bf16  batch tile (cast to bf16 in-body for the MXU)
        # w_ref: (S, H, H) bf16      all stage weights, resident in VMEM
        # b_ref: (S, 1, H) f32       all stage biases, resident in VMEM
        h = x_ref[...].astype(jnp.bfloat16)
        for s in range(stage_num):                       # static unroll over stages
            y = jnp.dot(h, w_ref[s], preferred_element_type=jnp.float32)
            y = y + b_ref[s]                             # f32 bias add
            if s < stage_num - 1:
                # Inter-stage activation stays in vregs — no VMEM scratch round trip.
                h = jax.nn.gelu(y, approximate=True).astype(jnp.bfloat16)
            else:
                o_ref[...] = y.astype(o_ref.dtype)       # last stage: plain linear head
    return kernel


def fused_pipeline_forward(x, w_stack, b_stack, *, out_dtype=jnp.bfloat16):
    """All pipeline stages fused in a single pallas_call; the grid iterates
    MXU-sized batch tiles (decoupled from the pipeline microbatch count)."""
    B, H = x.shape
    S = w_stack.shape[0]
    tm = _pick_batch_tile(B)

    return pl.pallas_call(
        _fused_kernel_factory(S),
        out_shape=jax.ShapeDtypeStruct((B, H), out_dtype),
        grid_spec=pltpu.PrefetchScalarGridSpec(
            num_scalar_prefetch=0,
            grid=(B // tm,),
            in_specs=[
                pl.BlockSpec((tm, H), lambda i: (i, 0)),        # activation batch tile
                pl.BlockSpec((S, H, H), lambda i: (0, 0, 0)),   # all weights (constant index -> fetched once)
                pl.BlockSpec((S, 1, H), lambda i: (0, 0, 0)),   # all biases  (constant index -> fetched once)
            ],
            out_specs=pl.BlockSpec((tm, H), lambda i: (i, 0)),
        ),
        compiler_params=pltpu.CompilerParams(
            dimension_semantics=("parallel",),          # shard batch tiles across TCs
            vmem_limit_bytes=_VMEM_LIMIT_BYTES,
        ),
    )(x, w_stack, b_stack)                              # x stays f32; cast in-kernel


# ----------------------------------------------------------------------------
# Single-stage weight-resident path: per-stage pallas_call, grid over batch only
# ----------------------------------------------------------------------------

def _resident_stage_kernel_factory(apply_gelu: bool):
    def kernel(x_ref, w_ref, b_ref, o_ref):
        h = x_ref[...].astype(jnp.bfloat16)
        y = jnp.dot(h, w_ref[...], preferred_element_type=jnp.float32)
        y = y + b_ref[...]
        if apply_gelu:
            y = jax.nn.gelu(y, approximate=True)
        o_ref[...] = y.astype(o_ref.dtype)
    return kernel


def resident_stage_pipeline_forward(x, w_stack, b_stack, *, out_dtype=jnp.bfloat16):
    """One pallas_call per stage with the full (H, H) weight resident in VMEM
    (constant index map => the weight is read from HBM once per stage, not
    B/tm times as in the K/N-tiled fallback)."""
    B, H = x.shape
    S = w_stack.shape[0]
    tm = _pick_batch_tile(B)

    act = x                                              # f32 in; kernels cast to bf16
    for s in range(S):
        apply_gelu = s < S - 1
        last = s == S - 1
        act = pl.pallas_call(
            _resident_stage_kernel_factory(apply_gelu),
            out_shape=jax.ShapeDtypeStruct(
                (B, H), out_dtype if last else jnp.bfloat16),
            grid_spec=pltpu.PrefetchScalarGridSpec(
                num_scalar_prefetch=0,
                grid=(B // tm,),
                in_specs=[
                    pl.BlockSpec((tm, H), lambda i: (i, 0)),
                    pl.BlockSpec((H, H), lambda i: (0, 0)),   # resident weight
                    pl.BlockSpec((1, H), lambda i: (0, 0)),   # resident bias
                ],
                out_specs=pl.BlockSpec((tm, H), lambda i: (i, 0)),
            ),
            compiler_params=pltpu.CompilerParams(
                dimension_semantics=("parallel",),
                vmem_limit_bytes=_VMEM_LIMIT_BYTES,
            ),
        )(act, w_stack[s], b_stack[s])
    return act


# ----------------------------------------------------------------------------
# Staged fallback: per-stage pallas_call with M/N/K tiling (weights streamed)
# ----------------------------------------------------------------------------

def _tiled_stage_kernel_factory(apply_gelu: bool):
    def kernel(x_ref, w_ref, b_ref, o_ref, acc_ref):
        # grid = (M tiles, N tiles, K tiles); K is innermost / "arbitrary".
        k = pl.program_id(2)

        @pl.when(k == 0)
        def _():
            acc_ref[...] = jnp.zeros_like(acc_ref)

        acc_ref[...] += jnp.dot(x_ref[...].astype(jnp.bfloat16), w_ref[...],
                                preferred_element_type=jnp.float32)

        # Bias + activation only in the epilogue (exactly once per output tile).
        @pl.when(k == pl.num_programs(2) - 1)
        def _():
            y = acc_ref[...] + b_ref[...]
            if apply_gelu:
                y = jax.nn.gelu(y, approximate=True)
            o_ref[...] = y.astype(o_ref.dtype)

    return kernel


def staged_pipeline_forward(x, w_stack, b_stack, *, out_dtype=jnp.bfloat16):
    """Per-stage pallas_call with K/N weight tiling — used only when even one
    (H, H) weight does not fit VMEM (very large hidden)."""
    B, H = x.shape
    S = w_stack.shape[0]
    tm = _pick_batch_tile(B)
    tn = _pick_tile(H, preferred=(512, 256, 128))   # wider tn: halves re-read of x
    tk = _pick_tile(H, preferred=(512, 256, 128))

    act = x                                          # f32 in; kernels cast to bf16
    for s in range(S):
        apply_gelu = s < S - 1
        last = s == S - 1
        act = pl.pallas_call(
            _tiled_stage_kernel_factory(apply_gelu),
            out_shape=jax.ShapeDtypeStruct(
                (B, H), out_dtype if last else jnp.bfloat16),
            grid_spec=pltpu.PrefetchScalarGridSpec(
                num_scalar_prefetch=0,
                grid=(B // tm, H // tn, H // tk),
                in_specs=[
                    pl.BlockSpec((tm, tk), lambda i, j, k: (i, k)),
                    pl.BlockSpec((tk, tn), lambda i, j, k: (k, j)),
                    pl.BlockSpec((1, tn), lambda i, j, k: (0, j)),
                ],
                out_specs=pl.BlockSpec((tm, tn), lambda i, j, k: (i, j)),
                scratch_shapes=[pltpu.VMEM((tm, tn), jnp.float32)],
            ),
            compiler_params=pltpu.CompilerParams(
                dimension_semantics=("parallel", "parallel", "arbitrary"),
                vmem_limit_bytes=_VMEM_LIMIT_BYTES,
            ),
        )(act, w_stack[s], b_stack[s])
    return act


# ----------------------------------------------------------------------------
# Model wrapper (analogue of PipelineModel)
# ----------------------------------------------------------------------------

class PipelineModelPallas:
    """JAX/Pallas analogue of PipelineModel: forward-only pipelined inner model.

    The pipeline "microbatch" axis is realized as the batch-tile grid axis of
    the Pallas call; the tile size is chosen for the MXU and is decoupled from
    `num_microbatches` (kept as scheduling metadata only).
    """

    def __init__(self, stage_num: int, num_microbatches: int, hidden: int,
                 seed: int = 0, out_dtype=jnp.float32):
        assert hidden % 128 == 0, "hidden must be lane-aligned (multiple of 128)"
        self.stage_num = stage_num
        self.num_microbatches = num_microbatches   # scheduling metadata only
        self.hidden = hidden
        self.out_dtype = out_dtype

        key = jax.random.PRNGKey(seed)
        ws, bs = [], []
        for _ in range(stage_num):
            key, kw, kb = jax.random.split(key, 3)
            w = (jax.random.normal(kw, (hidden, hidden), jnp.float32)
                 / jnp.sqrt(jnp.float32(hidden)))
            b = 0.01 * jax.random.normal(kb, (1, hidden), jnp.float32)
            ws.append(w.astype(jnp.bfloat16))      # bf16 weights for the MXU
            bs.append(b)                           # f32 bias
        self.w_stack = jnp.stack(ws)               # (S, H, H) bf16
        self.b_stack = jnp.stack(bs)               # (S, 1, H) f32

    # --- VMEM accounting (resident inputs double-buffered => counted at 2x) ---

    def _activation_bytes(self, tm: int) -> int:
        H = self.hidden
        out_sz = max(jnp.dtype(self.out_dtype).itemsize, 2)
        # double-buffered f32 input tile + double-buffered output tile
        # + ~2 tiles of f32 working set for the per-stage y / GELU temporaries.
        return 2 * tm * H * 4 + 2 * tm * H * out_sz + 2 * tm * H * 4

    def _fused_fits_vmem(self, batch: int) -> bool:
        tm = _pick_batch_tile(batch)
        H, S = self.hidden, self.stage_num
        w_bytes = 2 * S * H * H * 2                # 2x: pipeline double-buffers inputs
        b_bytes = 2 * S * H * 4
        return w_bytes + b_bytes + self._activation_bytes(tm) <= _VMEM_BUDGET_BYTES

    def _single_stage_fits_vmem(self, batch: int) -> bool:
        tm = _pick_batch_tile(batch)
        H = self.hidden
        w_bytes = 2 * H * H * 2                    # one resident (H, H) bf16 weight, 2x buffered
        b_bytes = 2 * H * 4
        return w_bytes + b_bytes + self._activation_bytes(tm) <= _VMEM_BUDGET_BYTES

    # --- forward ---

    def forward(self, x):
        B, H = x.shape
        assert H == self.hidden
        assert B % 8 == 0, "batch must be sublane-aligned"
        assert B % self.num_microbatches == 0, "batch must divide into microbatches"
        if self._fused_fits_vmem(B):
            return fused_pipeline_forward(
                x, self.w_stack, self.b_stack, out_dtype=self.out_dtype)
        if self._single_stage_fits_vmem(B):
            return resident_stage_pipeline_forward(
                x, self.w_stack, self.b_stack, out_dtype=self.out_dtype)
        return staged_pipeline_forward(
            x, self.w_stack, self.b_stack, out_dtype=self.out_dtype)

    def forward_ref(self, x):
        # Pure-JAX reference mirroring the kernel numerics (bf16 MXU inputs,
        # f32 accumulate / bias / tanh-GELU).  Note: PyTorch nn.GELU defaults
        # to the exact erf form; the tanh form is used consistently here.
        act = x
        for s in range(self.stage_num):
            y = jnp.dot(act.astype(jnp.bfloat16), self.w_stack[s],
                        preferred_element_type=jnp.float32)
            y = y + self.b_stack[s]
            if s < self.stage_num - 1:
                y = jax.nn.gelu(y, approximate=True)
            act = y
        return act


if __name__ == "__main__":
    # Small deterministic example: 2 stages, lane-dense hidden, batch tiled at 256.
    stage_num = 2
    num_microbatches = 4
    batch, hidden = 512, 128

    model = PipelineModelPallas(stage_num=stage_num,
                                num_microbatches=num_microbatches,
                                hidden=hidden,
                                seed=0)

    x = jax.random.normal(jax.random.PRNGKey(0), (batch, hidden), jnp.float32)

    ref = model.forward_ref(x)

    # Automatic path selection (fused for these shapes), f32 writeback.
    out = jax.block_until_ready(model.forward(x))
    assert out.shape == (batch, hidden)
    assert jnp.allclose(out, ref, atol=1e-2, rtol=1e-2), "forward() mismatch"

    # Exercise all three paths explicitly against the pure-JAX reference.
    out_fused = jax.block_until_ready(
        fused_pipeline_forward(x, model.w_stack, model.b_stack,
                               out_dtype=jnp.float32))
    out_resident = jax.block_until_ready(
        resident_stage_pipeline_forward(x, model.w_stack, model.b_stack,
                                        out_dtype=jnp.float32))
    out_staged = jax.block_until_ready(
        staged_pipeline_forward(x, model.w_stack, model.b_stack,
                                out_dtype=jnp.float32))
    assert jnp.allclose(out_fused, ref, atol=1e-2, rtol=1e-2), "fused path mismatch"
    assert jnp.allclose(out_resident, ref, atol=1e-2, rtol=1e-2), "resident path mismatch"
    assert jnp.allclose(out_staged, ref, atol=1e-2, rtol=1e-2), "staged path mismatch"

    # bf16-writeback smoke test (default out_dtype of the standalone entry point).
    out_bf16 = jax.block_until_ready(
        fused_pipeline_forward(x, model.w_stack, model.b_stack))
    assert out_bf16.dtype == jnp.bfloat16
    assert jnp.allclose(out_bf16.astype(jnp.float32), ref,
                        atol=5e-2, rtol=5e-2), "bf16 writeback mismatch"

    print("KERNEL_OK")
</pallas_src>

<mosaic_0001>
module attributes {stable_mosaic.version = 11 : i64} {
  func.func @kernel(%arg0: i32, %arg1: memref<256x128xf32, #tpu.memory_space<vmem>>, %arg2: memref<2x128x128xbf16, #tpu.memory_space<vmem>>, %arg3: memref<2x1x128xf32, #tpu.memory_space<vmem>>, %arg4: memref<256x128xf32, #tpu.memory_space<vmem>>) attributes {dimension_semantics = [#tpu.dimension_semantics<parallel>], iteration_bounds = array<i64: 2>, scalar_prefetch = 0 : i64, scratch_operands = 0 : i64, tpu.core_type = #tpu.core_type<tc>, window_params = [{transform_indices = @transform_0, window_bounds = array<i64: 256, 128>}, {pipeline_mode = #tpu.pipeline_mode<synchronous>, transform_indices = @transform_1, window_bounds = array<i64: 2, 128, 128>}, {pipeline_mode = #tpu.pipeline_mode<synchronous>, transform_indices = @transform_2, window_bounds = array<i64: 2, 1, 128>}, {transform_indices = @transform_3, window_bounds = array<i64: 256, 128>}]} {
    %c0 = arith.constant 0 : index
    %c0_0 = arith.constant 0 : index
    %0 = vector.load %arg1[%c0, %c0_0] : memref<256x128xf32, #tpu.memory_space<vmem>>, vector<256x128xf32>
    %1 = arith.truncf %0 : vector<256x128xf32> to vector<256x128xbf16>
    %c0_1 = arith.constant 0 : index
    %c0_2 = arith.constant 0 : index
    %c0_3 = arith.constant 0 : index
    %2 = vector.load %arg2[%c0_1, %c0_2, %c0_3] : memref<2x128x128xbf16, #tpu.memory_space<vmem>>, vector<1x128x128xbf16>
    %3 = vector.shape_cast %2 : vector<1x128x128xbf16> to vector<128x128xbf16>
    %cst = arith.constant dense<0.000000e+00> : vector<256x128xf32>
    %4 = tpu.matmul %1, %3, %cst {dimension_numbers = #tpu.dot_dimension_numbers<[1], [0], [0], [1], [0, 0, 1, 1], [], []>} : vector<256x128xbf16>, vector<128x128xbf16>, vector<256x128xf32> -> vector<256x128xf32>
    %c0_4 = arith.constant 0 : index
    %c0_5 = arith.constant 0 : index
    %c0_6 = arith.constant 0 : index
    %5 = vector.load %arg3[%c0_4, %c0_5, %c0_6] : memref<2x1x128xf32, #tpu.memory_space<vmem>>, vector<1x1x128xf32>
    %6 = vector.shape_cast %5 : vector<1x1x128xf32> to vector<1x128xf32>
    %7 = vector.broadcast %6 : vector<1x128xf32> to vector<256x128xf32>
    %8 = arith.addf %4, %7 : vector<256x128xf32>
    %9 = arith.mulf %8, %8 : vector<256x128xf32>
    %10 = arith.mulf %8, %9 : vector<256x128xf32>
    %cst_7 = arith.constant 4.471500e-02 : f32
    %11 = vector.broadcast %cst_7 : f32 to vector<256x128xf32>
    %12 = arith.mulf %11, %10 : vector<256x128xf32>
    %13 = arith.addf %8, %12 : vector<256x128xf32>
    %cst_8 = arith.constant 0.797884583 : f32
    %14 = vector.broadcast %cst_8 : f32 to vector<256x128xf32>
    %15 = arith.mulf %14, %13 : vector<256x128xf32>
    %16 = math.tanh %15 : vector<256x128xf32>
    %cst_9 = arith.constant 1.000000e+00 : f32
    %17 = vector.broadcast %cst_9 : f32 to vector<256x128xf32>
    %18 = arith.addf %17, %16 : vector<256x128xf32>
    %cst_10 = arith.constant 5.000000e-01 : f32
    %19 = vector.broadcast %cst_10 : f32 to vector<256x128xf32>
    %20 = arith.mulf %19, %18 : vector<256x128xf32>
    %21 = arith.mulf %8, %20 : vector<256x128xf32>
    %22 = arith.truncf %21 : vector<256x128xf32> to vector<256x128xbf16>
    %c1 = arith.constant 1 : index
    %c0_11 = arith.constant 0 : index
    %c0_12 = arith.constant 0 : index
    %23 = vector.load %arg2[%c1, %c0_11, %c0_12] : memref<2x128x128xbf16, #tpu.memory_space<vmem>>, vector<1x128x128xbf16>
    %24 = vector.shape_cast %23 : vector<1x128x128xbf16> to vector<128x128xbf16>
    %cst_13 = arith.constant dense<0.000000e+00> : vector<256x128xf32>
    %25 = tpu.matmul %22, %24, %cst_13 {dimension_numbers = #tpu.dot_dimension_numbers<[1], [0], [0], [1], [0, 0, 1, 1], [], []>} : vector<256x128xbf16>, vector<128x128xbf16>, vector<256x128xf32> -> vector<256x128xf32>
    %c1_14 = arith.constant 1 : index
    %c0_15 = arith.constant 0 : index
    %c0_16 = arith.constant 0 : index
    %26 = vector.load %arg3[%c1_14, %c0_15, %c0_16] : memref<2x1x128xf32, #tpu.memory_space<vmem>>, vector<1x1x128xf32>
    %27 = vector.shape_cast %26 : vector<1x1x128xf32> to vector<1x128xf32>
    %28 = vector.broadcast %27 : vector<1x128xf32> to vector<256x128xf32>
    %29 = arith.addf %25, %28 : vector<256x128xf32>
    %c0_17 = arith.constant 0 : index
    %c0_18 = arith.constant 0 : index
    %30 = vector.load %arg4[%c0_17, %c0_18] : memref<256x128xf32, #tpu.memory_space<vmem>>, vector<256x128xf32>
    tpu.vector_store %arg4[%c0_17, %c0_18], %29 {strides = array<i32>} : memref<256x128xf32, #tpu.memory_space<vmem>>, vector<256x128xf32>,
    return
  }
  func.func @transform_0(%arg0: i32) -> (i32, i32) {
    %c0_i32 = arith.constant 0 : i32
    %c0_i32_0 = arith.constant 0 : i32
    return %arg0, %c0_i32 : i32, i32
  }
  func.func @transform_1(%arg0: i32) -> (i32, i32, i32) {
    %c0_i32 = arith.constant 0 : i32
    %c0_i32_0 = arith.constant 0 : i32
    %c0_i32_1 = arith.constant 0 : i32
    %c0_i32_2 = arith.constant 0 : i32
    return %c0_i32, %c0_i32_0, %c0_i32_1 : i32, i32, i32
  }
  func.func @transform_2(%arg0: i32) -> (i32, i32, i32) {
    %c0_i32 = arith.constant 0 : i32
    %c0_i32_0 = arith.constant 0 : i32
    %c0_i32_1 = arith.constant 0 : i32
    %c0_i32_2 = arith.constant 0 : i32
    return %c0_i32, %c0_i32_0, %c0_i32_1 : i32, i32, i32
  }
  func.func @transform_3(%arg0: i32) -> (i32, i32) {
    %c0_i32 = arith.constant 0 : i32
    %c0_i32_0 = arith.constant 0 : i32
    return %arg0, %c0_i32 : i32, i32
  }
}

</mosaic_0001>

<bundles_post_ra>
// kernel: tpu_custom_call.1
= control target key start
LH: loop header
LB: loop body
LE: loop exit
PB: predicated region body
PF: predicated region fallthrough
CT: control target
= control target key end

     0   :  { %8 = vsyncpa [#allocation3], 0  ;;  %s2272_s0 = inlined_call_operand.hbm [shape: f32[512,128], index: 0, kind: input, shape index: {}]   ;;  %s2273_s1 = inlined_call_operand.hbm [shape: bf16[2,128,128], index: 1, kind: input, shape index: {}]   ;;  %s2274_s2 = inlined_call_operand.vmem [shape: f32[2,1,128], index: 2, kind: input, shape index: {}]   ;;  %s2275_s3 = inlined_call_operand.hbm [shape: f32[512,128], index: 3, kind: output, shape index: {}]  }
   0x1   :  { %10 = vsyncpa [#allocation3 + $0x1], 0 }
   0x2   :  { %11 = vsyncpa [#allocation6], 0 }
   0x3   :  { %12 = vsyncpa [#allocation4], 0 }
   0x4   :  { %14 = vsyncpa [#allocation4 + $0x1], 0  ;;  %s1637_s12 = smov 0   ;;  %s1639_s13 = smov 0  }
   0x5   :  { %s1641_s14 = smov 0   ;;  %s1643_s15 = smov 0  }
   0x6 LB: > { %s1658_s16 = sadd.s32 4294967295, %s1606_s15   ;;  %s1154_s17 = sadd.s32 4294967294, %s1606_s15   ;;  %s1606_s15 = sphi %s1643_s15, %s2295_s15   ;;  %s1602_s14 = sphi %s1641_s14, %s2294_s14   ;;  %s1598_s13 = sphi %s1639_s13, %s2293_s13   ;;  %s1594_s12 = sphi %s1637_s12, %s2292_s12  }
   0x7   : > { %p40_p0 = scmp.ne.s32.totalorder %s1598_s13, %s1594_s12  ;;  %p2276_p1 = scmp.eq.s32.totalorder %s1658_s16, 0 }
   0x8   : > { %p112_p3 = scmp.eq.s32.totalorder %s1154_s17, 1  ;;  %p1155_p5 = scmp.ge.s32.totalorder %s1606_s15, 1 }
   0x9   : > { %p1667_p4 = por %p2276_p1, %p40_p0  ;;  %p119_p7 = scmp.lt.s32.totalorder %s1606_s15, 3 }
   0xa   : > { %p1672_p6 = por %p112_p3, %p40_p0  ;;  %s1608_s21 = smov [#allocation5]  }
   0xb   : > { %s2279_s18 = scalar_select %p1667_p4, 1, 0 }
   0xc   : > { %s2280_s19 = scalar_select %p1672_p6, 1, 0 }
   0xd   : > { %p1677_p8 = pnand %p1155_p5, %p119_p7  ;;  %s131_s22 = sshll.u32 %s1608_s21, 4  ;;  %s1681_s22 = int_to_ptr.vmem [resolvable:$true] %s131_s22 }
   0xe   : > { %s1693_s24 = sadd.s32 1, %s1606_s15   ;;  %s27_s25 = sadd.s32 1, %s1602_s14 }
   0xf   : > { %s2281_s20 = scalar_select %p1677_p8, 1, 0 }
  0x10   : > { %p1343_p9 = pneg %p1677_p8  ;;  %s24_s26 = ssub.s32 %s1606_s15, %s1693_s24 }
  0x11   : > { %s1478_s29 = scalar_lea.hbm %s2273_s1, 2048 }
  0x12   : > { %p1688_p11 = pnand %p1343_p9, %p2276_p1  ;;  %p1479_p12 = scmp.ne.s32.totalorder %s2273_s1, %s1478_s29 }
  0x13   : > { %p1485_p5 = scmp.lt.u32.totalorder %s1478_s29, %s2273_s1 }
  0x14   : > { %p1480_p13 = pneg %p1688_p11 }
  0x16   : > { %p1481_p0 = pnand %p1480_p13, %p1479_p12 }
  0x18   : > { %p1482_p3 = pneg %p1481_p0 }
  0x1a   : > { %p1487_p7 = pnand %p1485_p5, %p1482_p3 }
  0x1c   : > { %1490 = shalt.err (!%p1487_p7)
}
  0x1d   : > { %s1491_s7 = scalar_lea.vmem %s1681_s22, 2048  ;;  %p1499_p2 = scmp.lt.s32.totalorder %s1681_s22, %s1681_s22 }
  0x1e   : > { %p1492_p9 = scmp.ne.s32.totalorder %s1681_s22, %s1491_s7  ;;  %p1500_p6 = scmp.lt.s32.totalorder %s1491_s7, %s1491_s7 }
  0x20   : > { %p1494_p10 = pnand %p1492_p9, %p1480_p13  ;;  %p1501_p4 = por %p1500_p6, %p1499_p2 }
  0x22   : > { %p1495_p1 = pneg %p1494_p10 }
  0x24   : > { %p1502_p8 = pnand %p1501_p4, %p1495_p1 }
  0x26   : > { %1505 = shalt.err (!%p1502_p8)
}
  0x27   : > { %s1609_s8 = smov 64   ;;  %s1610_s9 = smov 4  }
  0x28   : > { %1346 = dma.hbm_to_vmem [thread:$0]  (!%p1688_p11), %s2273_s1, 2048, %s1681_s22, [#allocation6], %s1609_s8, %s1609_s8, %s1610_s9  }
  0x29   : > { %p25_p2 = scmp.eq.s32.totalorder %s24_s26, 0  ;;  %p34_p1 = scmp.ne.s32.totalorder %s1602_s14, %s1598_s13 }
  0x2a   : > { %p35_p4 = scmp.eq.s32.totalorder %s1606_s15, 0  ;;  %p1356_p6 = scmp.lt.s32.totalorder %s1606_s15, 2 }
  0x2b   : > { %s1724_s17 = scalar_select %p25_p2, %s1602_s14, %s27_s25  }
  0x2c   : > { %p36_p8 = por %p35_p4, %p34_p1  ;;  %p2283_p10 = scmp.eq.s32.totalorder %s1658_s16, 1 }
  0x2d   : > { %s148_s27 = sand.u32 1, %s1602_s14   ;;  %s1189_s28 = sshll.u32 %s1606_s15, 12 }
  0x2e   : > { %p1728_p12 = por %p2283_p10, %p34_p1  ;;  %s1158_s29 = sshll.u32 %s148_s27, 8 }
  0x2f   : > { %s1737_s4 = scalar_lea.hbm %s2272_s0, %s1189_s28  ;;  %s152_s22 = scalar_lea.vmem [#allocation2], %s1158_s29 }
  0x30   : > { %s159_s25 = sshll.u32 %s152_s22, 4  ;;  %p1739_p11 = pnand %p1356_p6, %p36_p8  ;;  %s1743_s25 = int_to_ptr.vmem [resolvable:$true] %s159_s25 }
  0x31   : > { %s1745_s5 = scalar_lea.sflag [#allocation3], %s148_s27  ;;  %s1506_s6 = scalar_lea.hbm %s1737_s4, 4096 }
  0x32   : > { %p1507_p13 = scmp.ne.s32.totalorder %s1737_s4, %s1506_s6  ;;  %p1508_p0 = pneg %p1739_p11 }
  0x33   : > { %s1511_s9 = scalar_lea.hbm %s2272_s0, 8192  ;;  %p1512_p7 = scmp.lt.u32.totalorder %s1737_s4, %s2272_s0 }
  0x34   : > { %p1509_p3 = pnand %p1508_p0, %p1507_p13  ;;  %p1513_p9 = scmp.lt.u32.totalorder %s1511_s9, %s1506_s6 }
  0x35   : > { %p1515_p1 = scmp.lt.u32.totalorder %s1506_s6, %s1737_s4 }
  0x36   : > { %p1510_p5 = pneg %p1509_p3  ;;  %p1514_p2 = por %p1513_p9, %p1512_p7 }
  0x38   : > { %p1516_p4 = por %p1515_p1, %p1514_p2 }
  0x3a   : > { %p1517_p6 = pnand %p1516_p4, %p1510_p5 }
  0x3c   : > { %1520 = shalt.err (!%p1517_p6)
}
  0x3d   : > { %s1521_s27 = scalar_lea.vmem %s1743_s25, 4096  ;;  %s1611_s28 = smov [#allocation2]  }
  0x3e   : > { %p1522_p8 = scmp.ne.s32.totalorder %s1743_s25, %s1521_s27  ;;  %s1526_s29 = sshll.u32 %s1611_s28, 4  ;;  %s1527_s29 = int_to_ptr.vmem [resolvable:$false] %s1526_s29 }
  0x3f   : > { %s1528_s23 = scalar_lea.vmem %s1527_s29, 8192  ;;  %p1529_p3 = scmp.lt.s32.totalorder %s1743_s25, %s1527_s29 }
  0x40   : > { %p1524_p10 = pnand %p1522_p8, %p1508_p0  ;;  %p1530_p7 = scmp.lt.s32.totalorder %s1528_s23, %s1521_s27 }
  0x42   : > { %p1525_p13 = pneg %p1524_p10  ;;  %p1531_p9 = por %p1530_p7, %p1529_p3 }
  0x44   : > { %p1532_p2 = pnand %p1531_p9, %p1525_p13 }
  0x46   : > { %1535 = shalt.err (!%p1532_p2)
}
  0x47   : > { %s1612_s30 = smov 128   ;;  %s1613_s22 = smov 8  }
  0x48   : > { %1350 = dma.hbm_to_vmem [thread:$0]  (!%p1739_p11), %s1737_s4, 4096, %s1743_s25, %s1745_s5, %s1612_s30, %s1612_s30, %s1613_s22  }
  0x49   : > { %p2286_p0 = scmp.ne.s32.totalorder %s2281_s20, 0 }
  0x4a   : > { %s1776_s6 = sand.u32 (!%p2286_p0), 1, %s1598_s13   ;;  %p2287_p5 = scmp.ne.s32.totalorder (!%p2286_p0), %s2279_s18, 0 }
  0x4b   : > { %171 = sbr.rel (%p2286_p0) target bundleno = 673 (0x2a1), region = 32  ;;  %s1162_s7 = sshll.u32 (!%p2286_p0), %s1776_s6, 8 }
  0x4c   : > { %s174_s8 = scalar_lea.sflag (!%p2286_p0), [#allocation3], %s1776_s6  ;;  %s1782_s9 = scalar_lea.vmem (!%p2286_p0), [#allocation2], %s1162_s7 }
  0x52   : > { %1581 = dma.done.wait (%p2287_p5), %s174_s8, 4096  }
  0x53   : > { %1583 = vsyncadd (%p2287_p5), %s174_s8, 4294963200  ;;  %p2288_p11 = scmp.eq.s32.totalorder %s1658_s16, 0 }
  0x55   : > { %1585 = dma.done.wait (%p2288_p11), [#allocation6], 2048   ;;  %p2289_p1 = pmov %p2288_p11 }
  0x56   : > { %v1398_v0 = vld [vmem:[#allocation5] sm:$0xff]   ;;  %v1399_v1 = vld [vmem:[#allocation5 + $0x8] sm:$0xff]   ;;  %v1400_v2 = vld [vmem:[#allocation5 + $0x10] sm:$0xff]   ;;  %s2157_s26 = scalar_lea.vmem [#allocation7], %s1162_s7  ;;  %s1190_s5 = sshll.u32 %s1658_s16, 12 }
  0x57   : > { %1587 = vsyncadd (%p2289_p1), [#allocation6], 4294965248  ;;  %1239 = vmatprep.subr.bf16.mxu0 %v1398_v0  ;;  %v1401_v3 = vld [vmem:[#allocation5 + $0x18] sm:$0xff]   ;;  %v207_v4 = vld [vmem:[%s1782_s9] sm:$0xff]  ;;  %s1071_s10 = sshll.u32 %s2157_s26, 4  ;;  %s2222_s28 = scalar_lea.hbm %s2275_s3, %s1190_s5  ;;  %s2224_s10 = int_to_ptr.vmem [resolvable:$true] %s1071_s10 }
  0x58   : > { %1240 = vmatpush3.bf16.msra.mxu0 %v1398_v0  ;;  %v208_v5 = vld [vmem:[%s1782_s9 + $0x8] sm:$0xff]  ;;  %v1402_v7 = vld [vmem:[#allocation5 + $0x20] sm:$0xff]   ;;  %v1404_v9 = vld [vmem:[#allocation5 + $0x30] sm:$0xff]   ;;  %s1058_s16 = scalar_lea.sflag [#allocation4], %s1776_s6  ;;  %s1536_s29 = scalar_lea.vmem %s2224_s10, 4096 }
  0x59   : > { %1241 = vmatprep.subr.bf16.mxu0 %v1399_v1  ;;  %v239_v6 = vpack.c.bf16 %v208_v5, %v207_v4  ;;  %v1403_v8 = vld [vmem:[#allocation5 + $0x28] sm:$0xff]   ;;  %v1405_v10 = vld [vmem:[#allocation5 + $0x38] sm:$0xff]   ;;  %v209_v11 = vld [vmem:[%s1782_s9 + $0x10] sm:$0xff]  ;;  %p1537_p4 = scmp.ne.s32.totalorder %s2224_s10, %s1536_s29  ;;  %s1614_s23 = smov [#allocation7]  }
  0x5a   : > { %v210_v12 = vld [vmem:[%s1782_s9 + $0x18] sm:$0xff]  ;;  %v211_v13 = vld [vmem:[%s1782_s9 + $0x20] sm:$0xff]  ;;  %v212_v14 = vld [vmem:[%s1782_s9 + $0x28] sm:$0xff]  ;;  %s1540_s30 = sshll.u32 %s1614_s23, 4  ;;  %s1541_s30 = int_to_ptr.vmem [resolvable:$false] %s1540_s30 }
  0x5b   : > { %1255 = vmatprep.mubr.bf16.mxu0 %v239_v6  ;;  %v240_v15 = vpack.c.bf16 %v210_v12, %v209_v11  ;;  %v241_v16 = vpack.c.bf16 %v212_v14, %v211_v13  ;;  %v213_v17 = vld [vmem:[%s1782_s9 + $0x30] sm:$0xff]  ;;  %v214_v18 = vld [vmem:[%s1782_s9 + $0x38] sm:$0xff]  ;;  %v215_v19 = vld [vmem:[%s1782_s9 + $0x40] sm:$0xff]  ;;  %p1538_p6 = pnand %p1537_p4, %p1728_p12  ;;  %s1542_s22 = scalar_lea.vmem %s1541_s30, 8192 }
  0x5c   : > { %1242 = vmatpush3.bf16.msra.mxu0 %v1399_v1  ;;  %v216_v20 = vld [vmem:[%s1782_s9 + $0x48] sm:$0xff]  ;;  %v242_v21 = vpack.c.bf16 %v214_v18, %v213_v17  ;;  %v217_v23 = vld [vmem:[%s1782_s9 + $0x50] sm:$0xff]  ;;  %v218_v24 = vld [vmem:[%s1782_s9 + $0x58] sm:$0xff]  ;;  %p1543_p10 = scmp.lt.s32.totalorder %s2224_s10, %s1541_s30  ;;  %p1544_p13 = scmp.lt.s32.totalorder %s1542_s22, %s1536_s29 }
  0x5d   : > { %1243 = vmatprep.subr.bf16.mxu0 %v1400_v2  ;;  %v243_v22 = vpack.c.bf16 %v216_v20, %v215_v19  ;;  %v219_v25 = vld [vmem:[%s1782_s9 + $0x60] sm:$0xff]  ;;  %v220_v26 = vld [vmem:[%s1782_s9 + $0x68] sm:$0xff]  ;;  %v244_v27 = vpack.c.bf16 %v218_v24, %v217_v23  ;;  %v221_v29 = vld [vmem:[%s1782_s9 + $0x70] sm:$0xff]  ;;  %p1539_p8 = pneg %p1538_p6 }
  0x5e   : > { %v245_v28 = vpack.c.bf16 %v220_v26, %v219_v25  ;;  %v222_v30 = vld [vmem:[%s1782_s9 + $0x78] sm:$0xff]  ;;  %v223_v31 = vld [vmem:[%s1782_s9 + $0x80] sm:$0xff]  ;;  %v224_v32 = vld [vmem:[%s1782_s9 + $0x88] sm:$0xff]  ;;  %p1545_p3 = por %p1544_p13, %p1543_p10 }
  0x5f   : > { %v246_v33 = vpack.c.bf16 %v222_v30, %v221_v29  ;;  %v247_v34 = vpack.c.bf16 %v224_v32, %v223_v31  ;;  %v225_v35 = vld [vmem:[%s1782_s9 + $0x90] sm:$0xff]  ;;  %v226_v36 = vld [vmem:[%s1782_s9 + $0x98] sm:$0xff]  ;;  %v227_v37 = vld [vmem:[%s1782_s9 + $0xa0] sm:$0xff] }
  0x60   : > { %1244 = vmatpush3.bf16.msra.mxu0 %v1400_v2  ;;  %v228_v38 = vld [vmem:[%s1782_s9 + $0xa8] sm:$0xff]  ;;  %v248_v39 = vpack.c.bf16 %v226_v36, %v225_v35  ;;  %v229_v41 = vld [vmem:[%s1782_s9 + $0xb0] sm:$0xff]  ;;  %v230_v42 = vld [vmem:[%s1782_s9 + $0xb8] sm:$0xff]  ;;  %p1546_p7 = pnand %p1545_p3, %p1539_p8 }
  0x61   : > { %1245 = vmatprep.subr.bf16.mxu0 %v1401_v3  ;;  %v249_v40 = vpack.c.bf16 %v228_v38, %v227_v37  ;;  %v231_v43 = vld [vmem:[%s1782_s9 + $0xc0] sm:$0xff]  ;;  %v232_v44 = vld [vmem:[%s1782_s9 + $0xc8] sm:$0xff]  ;;  %v250_v45 = vpack.c.bf16 %v230_v42, %v229_v41  ;;  %v233_v47 = vld [vmem:[%s1782_s9 + $0xd0] sm:$0xff] }
  0x62   : > { %v251_v46 = vpack.c.bf16 %v232_v44, %v231_v43  ;;  %v234_v48 = vld [vmem:[%s1782_s9 + $0xd8] sm:$0xff]  ;;  %v235_v49 = vld [vmem:[%s1782_s9 + $0xe0] sm:$0xff]  ;;  %v236_v50 = vld [vmem:[%s1782_s9 + $0xe8] sm:$0xff] }
  0x63   : > { %v252_v51 = vpack.c.bf16 %v234_v48, %v233_v47  ;;  %v253_v52 = vpack.c.bf16 %v236_v50, %v235_v49  ;;  %v237_v53 = vld [vmem:[%s1782_s9 + $0xf0] sm:$0xff]  ;;  %v238_v54 = vld [vmem:[%s1782_s9 + $0xf8] sm:$0xff]  ;;  %v1406_v56 = vld [vmem:[#allocation5 + $0x40] sm:$0xff]  }
  0x64   : > { %1246 = vmatpush3.bf16.msra.mxu0 %v1401_v3  ;;  %v254_v55 = vpack.c.bf16 %v238_v54, %v237_v53  ;;  %1287 = vmatprep.subr.bf16.mxu1 %v1406_v56  ;;  %v1407_v57 = vld [vmem:[#allocation5 + $0x48] sm:$0xff]   ;;  %v1408_v58 = vld [vmem:[#allocation5 + $0x50] sm:$0xff]   ;;  %v1409_v59 = vld [vmem:[#allocation5 + $0x58] sm:$0xff]  }
  0x65   : > { %1247 = vmatprep.subr.bf16.mxu0 %v1402_v7  ;;  %1288 = vmatpush3.bf16.msra.mxu1 %v1406_v56  ;;  %v1410_v60 = vld [vmem:[#allocation5 + $0x60] sm:$0xff]   ;;  %v1411_v61 = vld [vmem:[#allocation5 + $0x68] sm:$0xff]   ;;  %v1412_v62 = vld [vmem:[#allocation5 + $0x70] sm:$0xff]  }
  0x66   : > { %1289 = vmatprep.subr.bf16.mxu1 %v1407_v57  ;;  %v1413_v63 = vld [vmem:[#allocation5 + $0x78] sm:$0xff]   ;;  %v1827_v0 = vld [vmem:[%s2274_s2] ss:$0 sm:$0xff] }
  0x68   : > { %1248 = vmatpush3.bf16.msra.mxu0 %v1402_v7 }
  0x69   : > { %1249 = vmatprep.subr.bf16.mxu0 %v1403_v8  ;;  %1290 = vmatpush3.bf16.msra.mxu1 %v1407_v57 }
  0x6a   : > { %1291 = vmatprep.subr.bf16.mxu1 %v1408_v58 }
  0x6c   : > { %1250 = vmatpush3.bf16.msra.mxu0 %v1403_v8 }
  0x6d   : > { %1251 = vmatprep.subr.bf16.mxu0 %v1404_v9  ;;  %1292 = vmatpush3.bf16.msra.mxu1 %v1408_v58 }
  0x6e   : > { %1293 = vmatprep.subr.bf16.mxu1 %v1409_v59 }
  0x70   : > { %1252 = vmatpush3.bf16.msra.mxu0 %v1404_v9 }
  0x71   : > { %1253 = vmatprep.subr.bf16.mxu0 %v1405_v10  ;;  %1294 = vmatpush3.bf16.msra.mxu1 %v1409_v59 }
  0x72   : > { %1295 = vmatprep.subr.bf16.mxu1 %v1410_v60 }
  0x74   : > { %1254 = vmatpush3.bf16.msra.mxu0 %v1405_v10 }
  0x75   : > { %1296 = vmatpush3.bf16.msra.mxu1 %v1410_v60 }
  0x76   : > { %1297 = vmatprep.subr.bf16.mxu1 %v1411_v61 }
  0x77   : > { %1256 = vmatmul.mubr.bf16.vlgmr.msra.gmra.mrb[0].mxu0 %v240_v15 }
  0x78   : > { %1259 = vmatprep.mubr.bf16.mxu0 %v241_v16 }
  0x79   : > { %1298 = vmatpush3.bf16.msra.mxu1 %v1411_v61 }
  0x7a   : > { %1299 = vmatprep.subr.bf16.mxu1 %v1412_v62 }
  0x7d   : > { %1300 = vmatpush3.bf16.msra.mxu1 %v1412_v62 }
  0x7e   : > { %1301 = vmatprep.subr.bf16.mxu1 %v1413_v63 }
  0x7f   : > { %1260 = vmatmul.mubr.bf16.gmra.mrb[4].mxu0 %v242_v21 }
  0x80   : > { %1263 = vmatprep.mubr.bf16.mxu0 %v243_v22 }
  0x81   : > { %1302 = vmatpush3.bf16.msra.mxu1 %v1413_v63 }
  0x87   : > { %1264 = vmatmul.mubr.bf16.gmra.mrb[8].mxu0 %v244_v27 }
  0x88   : > { %1267 = vmatprep.mubr.bf16.mxu0 %v245_v28 }
  0x8f   : > { %1268 = vmatmul.mubr.bf16.gmra.mrb[12].mxu0 %v246_v33 }
  0x90   : > { %1271 = vmatprep.mubr.bf16.mxu0 %v247_v34 }
  0x97   : > { %1272 = vmatmul.mubr.bf16.gmra.mrb[16].mxu0 %v248_v39 }
  0x98   : > { %1275 = vmatprep.mubr.bf16.mxu0 %v249_v40 }
  0x9f   : > { %1276 = vmatmul.mubr.bf16.gmra.mrb[20].mxu0 %v250_v45 }
  0xa0   : > { %1279 = vmatprep.mubr.bf16.mxu0 %v251_v46 }
  0xa7   : > { %1280 = vmatmul.mubr.bf16.gmra.mrb[24].mxu0 %v252_v51 }
  0xa8   : > { %1283 = vmatprep.mubr.bf16.mxu0 %v253_v52 }
  0xaf   : > { %1284 = vmatmul.mubr.bf16.gmra.mrb[28].mxu0 %v254_v55 }
 0x14a   : > { %v1257_v1 = vpop.f32.mrb[0].mxu0 }
 0x14b   : > { %v1830_v2 = vadd.f32 %v1257_v1, %v1827_v0  ;;  %v360_v3 = vpop.f32.mrb[1].mxu0 }
 0x14c   : > { %v1833_v4 = vadd.f32 %v1827_v0, %v360_v3  ;;  %v1258_v5 = vpop.f32.mrb[2].mxu0 }
 0x14d   : > { %v489_v6 = vmul.f32 %v1830_v2, %v1830_v2  ;;  %v1838_v7 = vadd.f32 %v1258_v5, %v1827_v0  ;;  %v363_v8 = vpop.f32.mrb[3].mxu0 }
 0x14e   : > { %v487_v9 = vmul.f32 %v1833_v4, %v1833_v4  ;;  %v1843_v10 = vadd.f32 %v1827_v0, %v363_v8 }
 0x14f   : > { %v521_v11 = vmul.f32 %v489_v6, %v1830_v2  ;;  %v490_v12 = vmul.f32 %v1838_v7, %v1838_v7 }
 0x150   : > { %v519_v13 = vmul.f32 %v487_v9, %v1833_v4  ;;  %v488_v14 = vmul.f32 %v1843_v10, %v1843_v10 }
 0x151   : > { %v553_v15 = vmul.f32 0.044715, %v521_v11  ;;  %v522_v16 = vmul.f32 %v490_v12, %v1838_v7 }
 0x152   : > { %v551_v17 = vmul.f32 0.044715, %v519_v13  ;;  %v520_v18 = vmul.f32 %v488_v14, %v1843_v10  ;;  %v1261_v19 = vpop.f32.mrb[4].mxu0 }
 0x153   : > { %v585_v20 = vadd.f32 %v553_v15, %v1830_v2  ;;  %v554_v21 = vmul.f32 0.044715, %v522_v16  ;;  %v1855_v22 = vadd.f32 %v1261_v19, %v1827_v0  ;;  %v376_v23 = vpop.f32.mrb[5].mxu0 }
 0x154   : > { %v552_v24 = vmul.f32 0.044715, %v520_v18  ;;  %v1858_v25 = vadd.f32 %v1827_v0, %v376_v23  ;;  %v1262_v26 = vpop.f32.mrb[6].mxu0  ;;  %v583_v27 = vadd.f32 %v551_v17, %v1833_v4 }
 0x155   : > { %v617_v28 = vmul.f32 0.7978846, %v585_v20  ;;  %v586_v29 = vadd.f32 %v554_v21, %v1838_v7  ;;  %v493_v30 = vmul.f32 %v1855_v22, %v1855_v22  ;;  %v1865_v31 = vadd.f32 %v1262_v26, %v1827_v0  ;;  %v379_v32 = vpop.f32.mrb[7].mxu0 }
 0x156   : > { %v491_v33 = vmul.f32 %v1858_v25, %v1858_v25  ;;  %v1870_v34 = vadd.f32 %v1827_v0, %v379_v32  ;;  %v584_v35 = vadd.f32 %v552_v24, %v1843_v10  ;;  %v615_v36 = vmul.f32 0.7978846, %v583_v27 }
 0x157   : > { %1414 = vtanh.f32 %v617_v28  ;;  %v618_v37 = vmul.f32 0.7978846, %v586_v29  ;;  %v525_v38 = vmul.f32 %v493_v30, %v1855_v22  ;;  %v494_v39 = vmul.f32 %v1865_v31, %v1865_v31 }
 0x158   : > { %v523_v40 = vmul.f32 %v491_v33, %v1858_v25  ;;  %v492_v41 = vmul.f32 %v1870_v34, %v1870_v34  ;;  %v616_v42 = vmul.f32 0.7978846, %v584_v35  ;;  %1416 = vtanh.f32 %v615_v36 }
 0x159   : > { %1418 = vtanh.f32 %v618_v37  ;;  %v557_v43 = vmul.f32 0.044715, %v525_v38  ;;  %v526_v44 = vmul.f32 %v494_v39, %v1865_v31 }
 0x15a   : > { %v555_v45 = vmul.f32 0.044715, %v523_v40  ;;  %v524_v46 = vmul.f32 %v492_v41, %v1870_v34  ;;  %v1265_v47 = vpop.f32.mrb[8].mxu0  ;;  %1420 = vtanh.f32 %v616_v42 }
 0x15b   : > { %v589_v48 = vadd.f32 %v557_v43, %v1855_v22  ;;  %v558_v49 = vmul.f32 0.044715, %v526_v44  ;;  %v1883_v50 = vadd.f32 %v1265_v47, %v1827_v0  ;;  %v392_v51 = vpop.f32.mrb[9].mxu0 }
 0x15c   : > { %v587_v52 = vadd.f32 %v555_v45, %v1858_v25  ;;  %v556_v53 = vmul.f32 0.044715, %v524_v46  ;;  %v1887_v54 = vadd.f32 %v1827_v0, %v392_v51  ;;  %v1266_v55 = vpop.f32.mrb[10].mxu0 }
 0x15d   : > { %v621_v56 = vmul.f32 0.7978846, %v589_v48  ;;  %v590_v57 = vadd.f32 %v558_v49, %v1865_v31  ;;  %v497_v58 = vmul.f32 %v1883_v50, %v1883_v50  ;;  %v1893_v59 = vadd.f32 %v1266_v55, %v1827_v0  ;;  %v395_v60 = vpop.f32.mrb[11].mxu0 }
 0x15e   : > { %v619_v61 = vmul.f32 0.7978846, %v587_v52  ;;  %v588_v62 = vadd.f32 %v556_v53, %v1870_v34  ;;  %v495_v63 = vmul.f32 %v1887_v54, %v1887_v54  ;;  %v1899_v1 = vadd.f32 %v1827_v0, %v395_v60 }
 0x15f   : > { %1422 = vtanh.f32 %v621_v56  ;;  %v622_v3 = vmul.f32 0.7978846, %v590_v57  ;;  %v529_v5 = vmul.f32 %v497_v58, %v1883_v50  ;;  %v498_v6 = vmul.f32 %v1893_v59, %v1893_v59 }
 0x160   : > { %1424 = vtanh.f32 %v619_v61  ;;  %v620_v8 = vmul.f32 0.7978846, %v588_v62  ;;  %v527_v9 = vmul.f32 %v495_v63, %v1887_v54  ;;  %v496_v11 = vmul.f32 %v1899_v1, %v1899_v1 }
 0x161   : > { %v1415_v12 = vpop.eup %1414  ;;  %1426 = vtanh.f32 %v622_v3  ;;  %v561_v13 = vmul.f32 0.044715, %v529_v5  ;;  %v530_v14 = vmul.f32 %v498_v6, %v1893_v59 }
 0x162   : > { %v1417_v15 = vpop.eup %1416  ;;  %1428 = vtanh.f32 %v620_v8  ;;  %v559_v16 = vmul.f32 0.044715, %v527_v9  ;;  %v528_v17 = vmul.f32 %v496_v11, %v1899_v1  ;;  %v1269_v18 = vpop.f32.mrb[12].mxu0  ;;  %v1909_v19 = vadd.f32 1.0, %v1415_v12 }
 0x163   : > { %v1419_v20 = vpop.eup %1418  ;;  %v593_v21 = vadd.f32 %v561_v13, %v1883_v50  ;;  %v562_v23 = vmul.f32 0.044715, %v530_v14  ;;  %v1913_v24 = vadd.f32 %v1269_v18, %v1827_v0  ;;  %v408_v26 = vpop.f32.mrb[13].mxu0  ;;  %v679_v27 = vadd.f32 1.0, %v1417_v15 }
 0x164   : > { %v591_v28 = vadd.f32 %v559_v16, %v1887_v54  ;;  %v560_v29 = vmul.f32 0.044715, %v528_v17  ;;  %v1917_v30 = vadd.f32 %v1827_v0, %v408_v26  ;;  %v1270_v32 = vpop.f32.mrb[14].mxu0  ;;  %v1919_v33 = vadd.f32 1.0, %v1419_v20  ;;  %v1421_v40 = vpop.eup %1420 }
 0x165   : > { %v625_v35 = vmul.f32 0.7978846, %v593_v21  ;;  %v594_v36 = vadd.f32 %v562_v23, %v1893_v59  ;;  %v501_v37 = vmul.f32 %v1913_v24, %v1913_v24  ;;  %v1925_v38 = vadd.f32 %v1270_v32, %v1827_v0  ;;  %v411_v39 = vpop.f32.mrb[15].mxu0 }
 0x166   : > { %v623_v41 = vmul.f32 0.7978846, %v591_v28  ;;  %v592_v42 = vadd.f32 %v560_v29, %v1899_v1  ;;  %v499_v43 = vmul.f32 %v1917_v30, %v1917_v30  ;;  %v1931_v44 = vadd.f32 %v1827_v0, %v411_v39 }
 0x167   : > { %1430 = vtanh.f32 %v625_v35  ;;  %v626_v45 = vmul.f32 0.7978846, %v594_v36  ;;  %v533_v46 = vmul.f32 %v501_v37, %v1913_v24  ;;  %v502_v47 = vmul.f32 %v1925_v38, %v1925_v38 }
 0x168   : > { %1432 = vtanh.f32 %v623_v41  ;;  %v624_v48 = vmul.f32 0.7978846, %v592_v42  ;;  %v531_v49 = vmul.f32 %v499_v43, %v1917_v30  ;;  %v500_v51 = vmul.f32 %v1931_v44, %v1931_v44 }
 0x169   : > { %v1939_v52 = vpop.eup %1422  ;;  %1434 = vtanh.f32 %v626_v45  ;;  %v565_v53 = vmul.f32 0.044715, %v533_v46  ;;  %v534_v55 = vmul.f32 %v502_v47, %v1925_v38  ;;  %v680_v56 = vadd.f32 1.0, %v1421_v40 }
 0x16a   : > { %v1942_v57 = vpop.eup %1424  ;;  %1436 = vtanh.f32 %v624_v48  ;;  %v563_v58 = vmul.f32 0.044715, %v531_v49  ;;  %v532_v60 = vmul.f32 %v500_v51, %v1931_v44  ;;  %v1273_v61 = vpop.f32.mrb[16].mxu0  ;;  %v711_v62 = vmul.f32 0.5, %v679_v27 }
 0x16b   : > { %v1945_v63 = vpop.eup %1426  ;;  %v597_v3 = vadd.f32 %v565_v53, %v1913_v24  ;;  %v566_v5 = vmul.f32 0.044715, %v534_v55  ;;  %v1949_v6 = vadd.f32 %v1273_v61, %v1827_v0  ;;  %v424_v8 = vpop.f32.mrb[17].mxu0  ;;  %v712_v9 = vmul.f32 0.5, %v680_v56 }
 0x16c   : > { %v1951_v11 = vpop.eup %1428  ;;  %v595_v12 = vadd.f32 %v563_v58, %v1917_v30  ;;  %v564_v13 = vmul.f32 0.044715, %v532_v60  ;;  %v1955_v14 = vadd.f32 %v1827_v0, %v424_v8  ;;  %v1274_v15 = vpop.f32.mrb[18].mxu0  ;;  %v743_v16 = vmul.f32 %v711_v62, %v1833_v4 }
 0x16d   : > { %v629_v17 = vmul.f32 0.7978846, %v597_v3  ;;  %v598_v18 = vadd.f32 %v566_v5, %v1925_v38  ;;  %v505_v20 = vmul.f32 %v1949_v6, %v1949_v6  ;;  %v1962_v21 = vadd.f32 %v1274_v15, %v1827_v0  ;;  %v427_v23 = vpop.f32.mrb[19].mxu0 }
 0x16e   : > { %v627_v26 = vmul.f32 0.7978846, %v595_v12  ;;  %v596_v27 = vadd.f32 %v564_v13, %v1931_v44  ;;  %v503_v28 = vmul.f32 %v1955_v14, %v1955_v14  ;;  %v1968_v29 = vadd.f32 %v1827_v0, %v427_v23 }
 0x16f   : > { %1438 = vtanh.f32 %v629_v17  ;;  %v630_v4 = vmul.f32 0.7978846, %v598_v18  ;;  %v537_v32 = vmul.f32 %v505_v20, %v1949_v6  ;;  %v506_v35 = vmul.f32 %v1962_v21, %v1962_v21 }
 0x170   : > { %1440 = vtanh.f32 %v627_v26  ;;  %v628_v36 = vmul.f32 0.7978846, %v596_v27  ;;  %v535_v37 = vmul.f32 %v503_v28, %v1955_v14  ;;  %v504_v39 = vmul.f32 %v1968_v29, %v1968_v29 }
 0x171   : > { %v1976_v40 = vpop.eup %1430  ;;  %1442 = vtanh.f32 %v630_v4  ;;  %v569_v41 = vmul.f32 0.044715, %v537_v32  ;;  %v538_v42 = vmul.f32 %v506_v35, %v1962_v21  ;;  %v744_v43 = vmul.f32 %v712_v9, %v1843_v10 }
 0x172   : > { %v1980_v45 = vpop.eup %1432  ;;  %1444 = vtanh.f32 %v628_v36  ;;  %v567_v46 = vmul.f32 0.044715, %v535_v37  ;;  %v536_v47 = vmul.f32 %v504_v39, %v1968_v29  ;;  %v713_v48 = vmul.f32 0.5, %v1909_v19  ;;  %v1277_v49 = vpop.f32.mrb[20].mxu0 }
 0x173   : > { %v1984_v51 = vpop.eup %1434  ;;  %v601_v53 = vadd.f32 %v569_v41, %v1949_v6  ;;  %v570_v55 = vmul.f32 0.044715, %v538_v42  ;;  %v775_v56 = vpack.c.bf16 %v744_v43, %v743_v16  ;;  %v714_v58 = vmul.f32 0.5, %v1919_v33  ;;  %v440_v60 = vpop.f32.mrb[21].mxu0 }
 0x174   : > { %v1988_v61 = vpop.eup %1436  ;;  %v599_v10 = vadd.f32 %v567_v46, %v1955_v14  ;;  %v568_v62 = vmul.f32 0.044715, %v536_v47  ;;  %v745_v3 = vmul.f32 %v713_v48, %v1830_v2  ;;  %v1993_v5 = vadd.f32 %v1277_v49, %v1827_v0  ;;  %v1278_v19 = vpop.f32.mrb[22].mxu0 }
 0x175   : > { %v633_v8 = vmul.f32 0.7978846, %v601_v53  ;;  %v602_v9 = vadd.f32 %v570_v55, %v1962_v21  ;;  %1303 = vmatprep.mubr.bf16.mxu1 %v775_v56  ;;  %v746_v12 = vmul.f32 %v714_v58, %v1838_v7  ;;  %v1998_v33 = vadd.f32 %v1827_v0, %v440_v60  ;;  %v443_v13 = vpop.f32.mrb[23].mxu0 }
 0x176   : > { %v631_v15 = vmul.f32 0.7978846, %v599_v10  ;;  %v600_v16 = vadd.f32 %v568_v62, %v1968_v29  ;;  %v509_v2 = vmul.f32 %v1993_v5, %v1993_v5  ;;  %v2004_v17 = vadd.f32 %v1278_v19, %v1827_v0 }
 0x177   : > { %1446 = vtanh.f32 %v633_v8  ;;  %v634_v18 = vmul.f32 0.7978846, %v602_v9  ;;  %v776_v20 = vpack.c.bf16 %v746_v12, %v745_v3  ;;  %v507_v23 = vmul.f32 %v1998_v33, %v1998_v33 }
 0x178   : > { %1448 = vtanh.f32 %v631_v15  ;;  %v632_v7 = vmul.f32 0.7978846, %v600_v16  ;;  %v541_v26 = vmul.f32 %v509_v2, %v1993_v5  ;;  %v510_v27 = vmul.f32 %v2004_v17, %v2004_v17 }
 0x179   : > { %v2011_v28 = vpop.eup %1438  ;;  %1450 = vtanh.f32 %v634_v18  ;;  %1304 = vmatmul.mubr.bf16.vlgmr.msra.gmra.mrb[0].mxu1 %v776_v20  ;;  %v539_v4 = vmul.f32 %v507_v23, %v1998_v33  ;;  %v2015_v32 = vadd.f32 %v1827_v0, %v443_v13  ;;  %v683_v35 = vadd.f32 1.0, %v1942_v57 }
 0x17a   : > { %v2018_v36 = vpop.eup %1440  ;;  %1452 = vtanh.f32 %v632_v7  ;;  %v573_v37 = vmul.f32 0.044715, %v541_v26  ;;  %v542_v39 = vmul.f32 %v510_v27, %v2004_v17  ;;  %v684_v41 = vadd.f32 1.0, %v1951_v11  ;;  %v1281_v42 = vpop.f32.mrb[24].mxu0 }
 0x17b   : > { %v2022_v43 = vpop.eup %1442  ;;  %v571_v46 = vmul.f32 0.044715, %v539_v4  ;;  %v508_v47 = vmul.f32 %v2015_v32, %v2015_v32  ;;  %v715_v48 = vmul.f32 0.5, %v683_v35  ;;  %v685_v49 = vadd.f32 1.0, %v1939_v52  ;;  %v456_v53 = vpop.f32.mrb[25].mxu0 }
 0x17c   : > { %v2027_v57 = vpop.eup %1444  ;;  %v605_v55 = vadd.f32 %v573_v37, %v1993_v5  ;;  %v574_v56 = vmul.f32 0.044715, %v542_v39  ;;  %v716_v58 = vmul.f32 0.5, %v684_v41  ;;  %v686_v60 = vadd.f32 1.0, %v1945_v63  ;;  %v1282_v11 = vpop.f32.mrb[26].mxu0 }
 0x17d   : > { %v603_v10 = vadd.f32 %v571_v46, %v1998_v33  ;;  %v540_v62 = vmul.f32 %v508_v47, %v2015_v32  ;;  %v747_v3 = vmul.f32 %v715_v48, %v1858_v25  ;;  %v717_v19 = vmul.f32 0.5, %v685_v49  ;;  %v459_v8 = vpop.f32.mrb[27].mxu0 }
 0x17e   : > { %v637_v9 = vmul.f32 0.7978846, %v605_v55  ;;  %v606_v52 = vadd.f32 %v574_v56, %v2004_v17  ;;  %v748_v12 = vmul.f32 %v716_v58, %v1870_v34  ;;  %v718_v13 = vmul.f32 0.5, %v686_v60 }
 0x17f   : > { %v635_v15 = vmul.f32 0.7978846, %v603_v10  ;;  %v572_v16 = vmul.f32 0.044715, %v540_v62  ;;  %v749_v2 = vmul.f32 %v717_v19, %v1855_v22  ;;  %v2038_v63 = vadd.f32 %v1281_v42, %v1827_v0 }
 0x180   : > { %1454 = vtanh.f32 %v637_v9  ;;  %v638_v18 = vmul.f32 0.7978846, %v606_v52  ;;  %v777_v20 = vpack.c.bf16 %v748_v12, %v747_v3  ;;  %v750_v25 = vmul.f32 %v718_v13, %v1865_v31 }
 0x181   : > { %v2041_v23 = vpop.eup %1446  ;;  %1456 = vtanh.f32 %v635_v15  ;;  %v604_v7 = vadd.f32 %v572_v16, %v2015_v32  ;;  %v513_v34 = vmul.f32 %v2038_v63, %v2038_v63  ;;  %v2047_v26 = vadd.f32 %v1827_v0, %v456_v53 }
 0x182   : > { %v2049_v22 = vpop.eup %1448  ;;  %1458 = vtanh.f32 %v638_v18  ;;  %1307 = vmatprep.mubr.bf16.mxu1 %v777_v20  ;;  %v778_v27 = vpack.c.bf16 %v750_v25, %v749_v2  ;;  %v2052_v4 = vadd.f32 %v1282_v11, %v1827_v0  ;;  %v2055_v31 = vadd.f32 %v1827_v0, %v459_v8  ;;  %v1285_v35 = vpop.f32.mrb[28].mxu0 }
 0x183   : > { %v2057_v37 = vpop.eup %1450  ;;  %v636_v39 = vmul.f32 0.7978846, %v604_v7  ;;  %v545_v41 = vmul.f32 %v513_v34, %v2038_v63  ;;  %v511_v42 = vmul.f32 %v2047_v26, %v2047_v26  ;;  %v687_v46 = vadd.f32 1.0, %v1980_v45  ;;  %v472_v47 = vpop.f32.mrb[29].mxu0 }
 0x184   : > { %v2063_v48 = vpop.eup %1452  ;;  %1308 = vmatmul.mubr.bf16.gmra.mrb[4].mxu1 %v778_v27  ;;  %v514_v49 = vmul.f32 %v2052_v4, %v2052_v4  ;;  %v512_v53 = vmul.f32 %v2055_v31, %v2055_v31  ;;  %v688_v55 = vadd.f32 1.0, %v1988_v61  ;;  %v689_v56 = vadd.f32 1.0, %v1976_v40  ;;  %v1286_v58 = vpop.f32.mrb[30].mxu0 }
 0x185   : > { %1460 = vtanh.f32 %v636_v39  ;;  %v577_v60 = vmul.f32 0.044715, %v545_v41  ;;  %v543_v11 = vmul.f32 %v511_v42, %v2047_v26  ;;  %v719_v45 = vmul.f32 0.5, %v687_v46  ;;  %v475_v10 = vpop.f32.mrb[31].mxu0 }
 0x186   : > { %v546_v62 = vmul.f32 %v514_v49, %v2052_v4  ;;  %v544_v3 = vmul.f32 %v512_v53, %v2055_v31  ;;  %v720_v19 = vmul.f32 0.5, %v688_v55  ;;  %v690_v8 = vadd.f32 1.0, %v1984_v51 }
 0x187   : > { %v609_v9 = vadd.f32 %v577_v60, %v2038_v63  ;;  %v575_v52 = vmul.f32 0.044715, %v543_v11  ;;  %v751_v61 = vmul.f32 %v719_v45, %v1887_v54  ;;  %v721_v40 = vmul.f32 0.5, %v689_v56 }
 0x188   : > { %v578_v12 = vmul.f32 0.044715, %v546_v62  ;;  %v576_v13 = vmul.f32 0.044715, %v544_v3  ;;  %v752_v15 = vmul.f32 %v720_v19, %v1899_v1  ;;  %v722_v16 = vmul.f32 0.5, %v690_v8 }
 0x189   : > { %v641_v2 = vmul.f32 0.7978846, %v609_v9  ;;  %v607_v18 = vadd.f32 %v575_v52, %v2047_v26  ;;  %v753_v20 = vmul.f32 %v721_v40, %v1883_v50  ;;  %v2081_v25 = vadd.f32 %v1285_v35, %v1827_v0 }
 0x18a   : > { %v2083_v51 = vpop.eup %1454  ;;  %v610_v7 = vadd.f32 %v578_v12, %v2052_v4  ;;  %v608_v54 = vadd.f32 %v576_v13, %v2055_v31  ;;  %v779_v34 = vpack.c.bf16 %v752_v15, %v751_v61  ;;  %v754_v27 = vmul.f32 %v722_v16, %v1893_v59 }
 0x18b   : > { %v2088_v39 = vpop.eup %1456  ;;  %1462 = vtanh.f32 %v641_v2  ;;  %v639_v1 = vmul.f32 0.7978846, %v607_v18  ;;  %v517_v41 = vmul.f32 %v2081_v25, %v2081_v25  ;;  %v2093_v50 = vadd.f32 %v1827_v0, %v472_v47 }
 0x18c   : > { %v2095_v35 = vpop.eup %1458  ;;  %v642_v42 = vmul.f32 0.7978846, %v610_v7  ;;  %v640_v46 = vmul.f32 0.7978846, %v608_v54  ;;  %1311 = vmatprep.mubr.bf16.mxu1 %v779_v34  ;;  %v780_v49 = vpack.c.bf16 %v754_v27, %v753_v20  ;;  %v2098_v53 = vadd.f32 %v1286_v58, %v1827_v0 }
 0x18d   : > { %1464 = vtanh.f32 %v639_v1  ;;  %v549_v59 = vmul.f32 %v517_v41, %v2081_v25  ;;  %v515_v55 = vmul.f32 %v2093_v50, %v2093_v50  ;;  %v2104_v56 = vadd.f32 %v1827_v0, %v475_v10 }
 0x18e   : > { %1466 = vtanh.f32 %v642_v42  ;;  %1312 = vmatmul.mubr.bf16.gmra.mrb[8].mxu1 %v780_v49  ;;  %v518_v47 = vmul.f32 %v2098_v53, %v2098_v53  ;;  %v691_v60 = vadd.f32 1.0, %v2018_v36  ;;  %v692_v11 = vadd.f32 1.0, %v2027_v57 }
 0x18f   : > { %v1461_v58 = vpop.eup %1460  ;;  %1468 = vtanh.f32 %v640_v46  ;;  %v581_v45 = vmul.f32 0.044715, %v549_v59  ;;  %v547_v62 = vmul.f32 %v515_v55, %v2093_v50  ;;  %v516_v3 = vmul.f32 %v2104_v56, %v2104_v56 }
 0x190   : > { %v550_v0 = vmul.f32 %v518_v47, %v2098_v53  ;;  %v723_v10 = vmul.f32 0.5, %v691_v60  ;;  %v724_v19 = vmul.f32 0.5, %v692_v11  ;;  %v693_v8 = vadd.f32 1.0, %v2011_v28 }
 0x191   : > { %v613_v9 = vadd.f32 %v581_v45, %v2081_v25  ;;  %v579_v52 = vmul.f32 0.044715, %v547_v62  ;;  %v548_v36 = vmul.f32 %v516_v3, %v2104_v56  ;;  %v694_v57 = vadd.f32 1.0, %v2022_v43 }
 0x192   : > { %v582_v61 = vmul.f32 0.044715, %v550_v0  ;;  %v755_v40 = vmul.f32 %v723_v10, %v1917_v30  ;;  %v756_v12 = vmul.f32 %v724_v19, %v1931_v44  ;;  %v725_v13 = vmul.f32 0.5, %v693_v8 }
 0x193   : > { %v645_v15 = vmul.f32 0.7978846, %v613_v9  ;;  %v611_v16 = vadd.f32 %v579_v52, %v2093_v50  ;;  %v580_v2 = vmul.f32 0.044715, %v548_v36  ;;  %v726_v18 = vmul.f32 0.5, %v694_v57 }
 0x194   : > { %v614_v28 = vadd.f32 %v582_v61, %v2098_v53  ;;  %v781_v20 = vpack.c.bf16 %v756_v12, %v755_v40  ;;  %v757_v7 = vmul.f32 %v725_v13, %v1913_v24  ;;  %v695_v54 = vadd.f32 1.0, %v2049_v22 }
 0x195   : > { %v1463_v34 = vpop.eup %1462  ;;  %1470 = vtanh.f32 %v645_v15  ;;  %v643_v43 = vmul.f32 0.7978846, %v611_v16  ;;  %v612_v30 = vadd.f32 %v580_v2, %v2104_v56  ;;  %v758_v44 = vmul.f32 %v726_v18, %v1925_v38 }
 0x196   : > { %v646_v27 = vmul.f32 0.7978846, %v614_v28  ;;  %1315 = vmatprep.mubr.bf16.mxu1 %v781_v20  ;;  %v696_v1 = vadd.f32 1.0, %v2063_v48  ;;  %v727_v41 = vmul.f32 0.5, %v695_v54  ;;  %v697_v42 = vadd.f32 1.0, %v2041_v23 }
 0x197   : > { %v1465_v46 = vpop.eup %1464  ;;  %1472 = vtanh.f32 %v643_v43  ;;  %v644_v49 = vmul.f32 0.7978846, %v612_v30  ;;  %v782_v24 = vpack.c.bf16 %v758_v44, %v757_v7  ;;  %v698_v22 = vadd.f32 1.0, %v2057_v37 }
 0x198   : > { %v1467_v59 = vpop.eup %1466  ;;  %1474 = vtanh.f32 %v646_v27  ;;  %v728_v55 = vmul.f32 0.5, %v696_v1  ;;  %v759_v47 = vmul.f32 %v727_v41, %v1955_v14  ;;  %v729_v60 = vmul.f32 0.5, %v697_v42 }
 0x199   : > { %v1469_v38 = vpop.eup %1468  ;;  %1476 = vtanh.f32 %v644_v49  ;;  %1316 = vmatmul.mubr.bf16.gmra.mrb[12].mxu1 %v782_v24  ;;  %v730_v11 = vmul.f32 0.5, %v698_v22  ;;  %v699_v48 = vadd.f32 1.0, %v2088_v39  ;;  %v700_v45 = vadd.f32 1.0, %v1461_v58  ;;  %v2151_v49 = vld [vmem:[%s2274_s2 + $0x1] ss:$0 sm:$0xff] }
 0x19a   : > { %v760_v23 = vmul.f32 %v728_v55, %v1968_v29  ;;  %v761_v62 = vmul.f32 %v729_v60, %v1949_v6  ;;  %v701_v3 = vadd.f32 1.0, %v2083_v51  ;;  %v702_v37 = vadd.f32 1.0, %v2095_v35 }
 0x19b   : > { %v762_v0 = vmul.f32 %v730_v11, %v1962_v21  ;;  %v731_v10 = vmul.f32 0.5, %v699_v48  ;;  %v732_v14 = vmul.f32 0.5, %v700_v45  ;;  %v703_v19 = vadd.f32 1.0, %v1465_v46 }
 0x19c   : > { %v783_v8 = vpack.c.bf16 %v760_v23, %v759_v47  ;;  %v733_v9 = vmul.f32 0.5, %v701_v3  ;;  %v734_v52 = vmul.f32 0.5, %v702_v37  ;;  %v704_v36 = vadd.f32 1.0, %v1469_v38 }
 0x19d   : > { %v784_v57 = vpack.c.bf16 %v762_v0, %v761_v62  ;;  %v763_v39 = vmul.f32 %v731_v10, %v1998_v33  ;;  %v764_v29 = vmul.f32 %v732_v14, %v2015_v32  ;;  %v735_v58 = vmul.f32 0.5, %v703_v19 }
 0x19e   : > { %1319 = vmatprep.mubr.bf16.mxu1 %v783_v8  ;;  %v765_v6 = vmul.f32 %v733_v9, %v1993_v5  ;;  %v766_v51 = vmul.f32 %v734_v52, %v2004_v17  ;;  %v736_v35 = vmul.f32 0.5, %v704_v36  ;;  %v705_v21 = vadd.f32 1.0, %v1463_v34 }
 0x19f   : > { %v1471_v61 = vpop.eup %1470  ;;  %v785_v40 = vpack.c.bf16 %v764_v29, %v763_v39  ;;  %v767_v12 = vmul.f32 %v735_v58, %v2047_v26  ;;  %v706_v13 = vadd.f32 1.0, %v1467_v59 }
 0x1a0   : > { %v786_v15 = vpack.c.bf16 %v766_v51, %v765_v6  ;;  %v768_v16 = vmul.f32 %v736_v35, %v2055_v31  ;;  %v737_v2 = vmul.f32 0.5, %v705_v21  ;;  %v709_v33 = vadd.f32 1.0, %v1471_v61 }
 0x1a1   : > { %v1473_v18 = vpop.eup %1472  ;;  %1320 = vmatmul.mubr.bf16.gmra.mrb[16].mxu1 %v784_v57  ;;  %v738_v32 = vmul.f32 0.5, %v706_v13 }
 0x1a2   : > { %v1475_v28 = vpop.eup %1474  ;;  %1323 = vmatprep.mubr.bf16.mxu1 %v785_v40  ;;  %v787_v5 = vpack.c.bf16 %v768_v16, %v767_v12  ;;  %v707_v20 = vadd.f32 1.0, %v1473_v18  ;;  %v769_v7 = vmul.f32 %v737_v2, %v2038_v63  ;;  %v741_v26 = vmul.f32 0.5, %v709_v33 }
 0x1a3   : > { %v1477_v17 = vpop.eup %1476  ;;  %v770_v54 = vmul.f32 %v738_v32, %v2052_v4  ;;  %v710_v34 = vadd.f32 1.0, %v1475_v28 }
 0x1a4   : > { %v708_v43 = vadd.f32 1.0, %v1477_v17  ;;  %v739_v30 = vmul.f32 0.5, %v707_v20  ;;  %v773_v1 = vmul.f32 %v741_v26, %v2081_v25 }
 0x1a5   : > { %v788_v44 = vpack.c.bf16 %v770_v54, %v769_v7  ;;  %v742_v31 = vmul.f32 0.5, %v710_v34 }
 0x1a6   : > { %v740_v27 = vmul.f32 0.5, %v708_v43  ;;  %v771_v42 = vmul.f32 %v739_v30, %v2093_v50 }
 0x1a7   : > { %v774_v41 = vmul.f32 %v742_v31, %v2098_v53 }
 0x1a8   : > { %v772_v46 = vmul.f32 %v740_v27, %v2104_v56 }
 0x1a9   : > { %1324 = vmatmul.mubr.bf16.gmra.mrb[20].mxu1 %v786_v15  ;;  %v790_v63 = vpack.c.bf16 %v774_v41, %v773_v1 }
 0x1aa   : > { %1327 = vmatprep.mubr.bf16.mxu1 %v787_v5  ;;  %v789_v4 = vpack.c.bf16 %v772_v46, %v771_v42 }
 0x1b1   : > { %1328 = vmatmul.mubr.bf16.gmra.mrb[24].mxu1 %v788_v44 }
 0x1b2   : > { %1331 = vmatprep.mubr.bf16.mxu1 %v789_v4 }
 0x1b9   : > { %1332 = vmatmul.mubr.bf16.gmra.mrb[28].mxu1 %v790_v63 }
 0x24c   : > { %v1305_v25 = vpop.f32.mrb[0].mxu1 }
 0x24d   : > { %v907_v53 = vadd.f32 %v1305_v25, %v2151_v49  ;;  %v898_v24 = vpop.f32.mrb[1].mxu1 }
 0x24e   : > { %v899_v50 = vadd.f32 %v2151_v49, %v898_v24  ;;  %v1306_v22 = vpop.f32.mrb[2].mxu1 }
 0x24f   : > { %1027 = vst [vmem:[%s2157_s26 + $0x10] sm:$0xff] %v907_v53  ;;  %v910_v56 = vadd.f32 %v1306_v22, %v2151_v49  ;;  %v901_v59 = vpop.f32.mrb[3].mxu1 }
 0x250   : > { %1025 = vst [vmem:[%s2157_s26] sm:$0xff] %v899_v50  ;;  %v902_v55 = vadd.f32 %v2151_v49, %v901_v59 }
 0x251   : > { %1028 = vst [vmem:[%s2157_s26 + $0x18] sm:$0xff] %v910_v56 }
 0x252   : > { %1026 = vst [vmem:[%s2157_s26 + $0x8] sm:$0xff] %v902_v55 }
 0x257   : > { %v1309_v47 = vpop.f32.mrb[4].mxu1 }
 0x258   : > { %v923_v60 = vadd.f32 %v1309_v47, %v2151_v49  ;;  %v914_v38 = vpop.f32.mrb[5].mxu1 }
 0x259   : > { %v915_v11 = vadd.f32 %v2151_v49, %v914_v38  ;;  %v1310_v48 = vpop.f32.mrb[6].mxu1 }
 0x25a   : > { %1031 = vst [vmem:[%s2157_s26 + $0x30] sm:$0xff] %v923_v60  ;;  %v926_v45 = vadd.f32 %v1310_v48, %v2151_v49  ;;  %v917_v23 = vpop.f32.mrb[7].mxu1 }
 0x25b   : > { %1029 = vst [vmem:[%s2157_s26 + $0x20] sm:$0xff] %v915_v11  ;;  %v918_v62 = vadd.f32 %v2151_v49, %v917_v23 }
 0x25c   : > { %1032 = vst [vmem:[%s2157_s26 + $0x38] sm:$0xff] %v926_v45 }
 0x25d   : > { %1030 = vst [vmem:[%s2157_s26 + $0x28] sm:$0xff] %v918_v62 }
 0x261   : > { %v1313_v3 = vpop.f32.mrb[8].mxu1 }
 0x262   : > { %v939_v37 = vadd.f32 %v1313_v3, %v2151_v49  ;;  %v930_v0 = vpop.f32.mrb[9].mxu1 }
 0x263   : > { %v931_v10 = vadd.f32 %v2151_v49, %v930_v0  ;;  %v1314_v14 = vpop.f32.mrb[10].mxu1 }
 0x264   : > { %1035 = vst [vmem:[%s2157_s26 + $0x50] sm:$0xff] %v939_v37  ;;  %v942_v19 = vadd.f32 %v1314_v14, %v2151_v49  ;;  %v933_v8 = vpop.f32.mrb[11].mxu1 }
 0x265   : > { %1033 = vst [vmem:[%s2157_s26 + $0x40] sm:$0xff] %v931_v10  ;;  %v934_v9 = vadd.f32 %v2151_v49, %v933_v8 }
 0x266   : > { %1036 = vst [vmem:[%s2157_s26 + $0x58] sm:$0xff] %v942_v19 }
 0x267   : > { %1034 = vst [vmem:[%s2157_s26 + $0x48] sm:$0xff] %v934_v9 }
 0x26c   : > { %v1317_v52 = vpop.f32.mrb[12].mxu1 }
 0x26d   : > { %v955_v36 = vadd.f32 %v1317_v52, %v2151_v49  ;;  %v946_v57 = vpop.f32.mrb[13].mxu1 }
 0x26e   : > { %v947_v39 = vadd.f32 %v2151_v49, %v946_v57  ;;  %v1318_v29 = vpop.f32.mrb[14].mxu1 }
 0x26f   : > { %1039 = vst [vmem:[%s2157_s26 + $0x70] sm:$0xff] %v955_v36  ;;  %v958_v58 = vadd.f32 %v1318_v29, %v2151_v49  ;;  %v949_v6 = vpop.f32.mrb[15].mxu1 }
 0x270   : > { %1037 = vst [vmem:[%s2157_s26 + $0x60] sm:$0xff] %v947_v39  ;;  %v950_v51 = vadd.f32 %v2151_v49, %v949_v6 }
 0x271   : > { %1040 = vst [vmem:[%s2157_s26 + $0x78] sm:$0xff] %v958_v58 }
 0x272   : > { %1038 = vst [vmem:[%s2157_s26 + $0x68] sm:$0xff] %v950_v51 }
 0x274   : > { %v1321_v35 = vpop.f32.mrb[16].mxu1 }
 0x275   : > { %v971_v21 = vadd.f32 %v1321_v35, %v2151_v49  ;;  %v962_v61 = vpop.f32.mrb[17].mxu1 }
 0x276   : > { %v963_v40 = vadd.f32 %v2151_v49, %v962_v61  ;;  %v1322_v12 = vpop.f32.mrb[18].mxu1 }
 0x277   : > { %1043 = vst [vmem:[%s2157_s26 + $0x90] sm:$0xff] %v971_v21  ;;  %v974_v13 = vadd.f32 %v1322_v12, %v2151_v49  ;;  %v965_v15 = vpop.f32.mrb[19].mxu1 }
 0x278   : > { %1041 = vst [vmem:[%s2157_s26 + $0x80] sm:$0xff] %v963_v40  ;;  %v966_v16 = vadd.f32 %v2151_v49, %v965_v15 }
 0x279   : > { %1044 = vst [vmem:[%s2157_s26 + $0x98] sm:$0xff] %v974_v13 }
 0x27a   : > { %1042 = vst [vmem:[%s2157_s26 + $0x88] sm:$0xff] %v966_v16 }
 0x27c   : > { %v1325_v2 = vpop.f32.mrb[20].mxu1 }
 0x27d   : > { %v987_v33 = vadd.f32 %v1325_v2, %v2151_v49  ;;  %v978_v18 = vpop.f32.mrb[21].mxu1 }
 0x27e   : > { %v979_v32 = vadd.f32 %v2151_v49, %v978_v18  ;;  %v1326_v28 = vpop.f32.mrb[22].mxu1 }
 0x27f   : > { %1047 = vst [vmem:[%s2157_s26 + $0xb0] sm:$0xff] %v987_v33  ;;  %v990_v5 = vadd.f32 %v1326_v28, %v2151_v49  ;;  %v981_v20 = vpop.f32.mrb[23].mxu1 }
 0x280   : > { %1045 = vst [vmem:[%s2157_s26 + $0xa0] sm:$0xff] %v979_v32  ;;  %v982_v17 = vadd.f32 %v2151_v49, %v981_v20 }
 0x281   : > { %1048 = vst [vmem:[%s2157_s26 + $0xb8] sm:$0xff] %v990_v5 }
 0x282   : > { %1046 = vst [vmem:[%s2157_s26 + $0xa8] sm:$0xff] %v982_v17 }
 0x284   : > { %v1329_v7 = vpop.f32.mrb[24].mxu1 }
 0x285   : > { %v1003_v54 = vadd.f32 %v1329_v7, %v2151_v49  ;;  %v994_v34 = vpop.f32.mrb[25].mxu1 }
 0x286   : > { %v995_v26 = vadd.f32 %v2151_v49, %v994_v34  ;;  %v1330_v43 = vpop.f32.mrb[26].mxu1 }
 0x287   : > { %1051 = vst [vmem:[%s2157_s26 + $0xd0] sm:$0xff] %v1003_v54  ;;  %v1006_v30 = vadd.f32 %v1330_v43, %v2151_v49  ;;  %v997_v44 = vpop.f32.mrb[27].mxu1 }
 0x288   : > { %1049 = vst [vmem:[%s2157_s26 + $0xc0] sm:$0xff] %v995_v26  ;;  %v998_v31 = vadd.f32 %v2151_v49, %v997_v44 }
 0x289   : > { %1052 = vst [vmem:[%s2157_s26 + $0xd8] sm:$0xff] %v1006_v30 }
 0x28a   : > { %1050 = vst [vmem:[%s2157_s26 + $0xc8] sm:$0xff] %v998_v31 }
 0x28c   : > { %v1333_v27 = vpop.f32.mrb[28].mxu1 }
 0x28d   : > { %v1019_v1 = vadd.f32 %v1333_v27, %v2151_v49  ;;  %v1010_v41 = vpop.f32.mrb[29].mxu1 }
 0x28e   : > { %v1011_v42 = vadd.f32 %v2151_v49, %v1010_v41  ;;  %v1334_v46 = vpop.f32.mrb[30].mxu1 }
 0x28f   : > { %1055 = vst [vmem:[%s2157_s26 + $0xf0] sm:$0xff] %v1019_v1  ;;  %v1022_v63 = vadd.f32 %v1334_v46, %v2151_v49  ;;  %v1013_v4 = vpop.f32.mrb[31].mxu1 }
 0x290   : > { %1053 = vst [vmem:[%s2157_s26 + $0xe0] sm:$0xff] %v1011_v42  ;;  %v1014_v25 = vadd.f32 %v2151_v49, %v1013_v4 }
 0x291   : > { %1056 = vst [vmem:[%s2157_s26 + $0xf8] sm:$0xff] %v1022_v63 }
 0x292   : > { %1054 = vst [vmem:[%s2157_s26 + $0xe8] sm:$0xff] %v1014_v25 }
 0x293   : > { %1549 = shalt.err (!%p1546_p7)
}
 0x294   : > { %s1550_s7 = scalar_lea.hbm %s2222_s28, 4096  ;;  %s1554_s18 = scalar_lea.hbm %s2275_s3, 8192 }
 0x295   : > { %p1551_p9 = scmp.ne.s32.totalorder %s2222_s28, %s1550_s7  ;;  %p1555_p5 = scmp.lt.u32.totalorder %s2222_s28, %s2275_s3 }
 0x296   : > { %p1556_p11 = scmp.lt.u32.totalorder %s1554_s18, %s1550_s7  ;;  %p1558_p4 = scmp.lt.u32.totalorder %s1550_s7, %s2222_s28 }
 0x297   : > { %p1552_p2 = pnand %p1551_p9, %p1728_p12 }
 0x298   : > { %p1557_p1 = por %p1556_p11, %p1555_p5 }
 0x299   : > { %p1553_p0 = pneg %p1552_p2 }
 0x29a   : > { %p1559_p6 = por %p1558_p4, %p1557_p1 }
 0x29c   : > { %p1560_p8 = pnand %p1559_p6, %p1553_p0 }
 0x29e   : > { %1563 = shalt.err (!%p1560_p8)
}
 0x29f   : > { %s1615_s25 = smov 128   ;;  %s1616_s26 = smov 8  }
 0x2a0   : > { %1341 = dma.vmem_to_hbm [thread:$0]  (%p1728_p12), %s2224_s10, 4096, %s2222_s28, %s1058_s16, %s1615_s25, %s1615_s25, %s1616_s26  }
 0x2a1 PF: > { %s1086_s5 = sand.u32 1, %s1594_s12   ;;  %p2290_p10 = scmp.ne.s32.totalorder %s2280_s19, 0 }
 0x2a2   : > { %p2291_p13 = scmp.ge.s32.totalorder %s1606_s15, 2  ;;  %s1087_s11 = scalar_lea.sflag [#allocation4], %s1086_s5 }
 0x2a4   : > { %p1352_p3 = pnand %p2291_p13, %p2290_p10 }
 0x2a6   : > { %1589 = dma.done.wait (!%p1352_p3), %s1087_s11, 4096  }
 0x2a7   : > { %1591 = vsyncadd (!%p1352_p3), %s1087_s11, 4294963200  ;;  %p17_p7 = scmp.ge.s32.totalorder %s1693_s24, 4   ;;  %s2292_s12 = smov %s1598_s13 }
 0x2a8   : > { %s2293_s13 = smov %s1602_s14  ;;  %s2294_s14 = smov %s1724_s17 }
 0x2a9   : > { %s2295_s15 = smov %s1693_s24  ;;  %19 = sbr.rel (!%p17_p7) target bundleno = 6 (0x6), region = 83 }
 0x2b0   :  { %1092 = vsyncpa [#allocation3], 1 }
 0x2b1   :  { %1094 = vsyncpa [#allocation3 + $0x1], 1 }
 0x2b2   :  { %1095 = vsyncpa [#allocation6], 1 }
 0x2b3   :  { %1096 = vsyncpa [#allocation4], 1 }
 0x2b4   :  { %1098 = vsyncpa [#allocation4 + $0x1], 1 }

</bundles_post_ra>
